<compile_context>
chip_gen: v7x
topology: tpu7x:2x2x1
jax: 0.10.0
libtpu: 0.0.40
codegen_flags: <defaults>
</compile_context>

<pallas_src>
import numpy as np
import jax
import jax.numpy as jnp
from jax import lax
from jax.experimental import pallas as pl
from jax.experimental.pallas import tpu as pltpu

DELTA = 1e-8


# ----------------------------------------------------------------------------
# Glue: knot vector, find-span, basis functions (Piegl & Tiller A2.1 / A2.2).
# This mirrors the PyTorch module's one-time __init__ precompute (host side).
# ----------------------------------------------------------------------------
def gen_knot_vector(p, n_ctrl):
    """Clamped uniform knot vector: (p+1) zeros, n_ctrl-p-1 interior, (p+1) ones."""
    num_segments = n_ctrl - p
    interior = np.linspace(0.0, 1.0, num_segments + 1)[1:-1]
    return np.concatenate([np.zeros(p + 1), interior, np.ones(p + 1)]).astype(np.float64)


def find_span(n_ctrl, p, u, U):
    n = n_ctrl - 1
    if u >= U[n + 1]:
        return n
    if u <= U[p]:
        return p
    low, high = p, n + 1
    mid = (low + high) // 2
    while u < U[mid] or u >= U[mid + 1]:
        if u < U[mid]:
            high = mid
        else:
            low = mid
        mid = (low + high) // 2
    return mid


def basis_funs(span, u, p, U):
    N = np.zeros(p + 1)
    left = np.zeros(p + 1)
    right = np.zeros(p + 1)
    N[0] = 1.0
    for j in range(1, p + 1):
        left[j] = u - U[span + 1 - j]
        right[j] = U[span + j] - u
        saved = 0.0
        for r in range(j):
            temp = N[r] / (right[r + 1] + left[j - r])
            N[r] = saved + right[r + 1] * temp
            saved = left[j - r] * temp
        N[j] = saved
    return N


def pre_compute_basis(samples, U, n_ctrl, p):
    """Return (span[i], N[i, 0..p]) for every sample."""
    spans = np.array([find_span(n_ctrl, p, float(s), U) for s in samples], dtype=np.int64)
    Nmat = np.stack([basis_funs(sp, float(s), p, U) for sp, s in zip(spans, samples)], axis=0)
    return spans, Nmat.astype(np.float32)


def dense_basis_matrix(spans, Nmat, n_ctrl, p):
    """Scatter span-local basis values into a dense (num_samples, n_ctrl) matrix."""
    out = np.zeros((Nmat.shape[0], n_ctrl), dtype=np.float32)
    for i in range(Nmat.shape[0]):
        out[i, spans[i] - p: spans[i] + 1] = Nmat[i]
    return out


# ----------------------------------------------------------------------------
# Pallas kernel
#   bu_blk_ref : (D1*OU, D1*M)     -- kron(I_D1, Bu), resident across the grid
#   bvt_ref    : (N, OV)           -- Bv^T, resident across the grid
#   ctrl_ref   : (Bblk, D1, M, N)  -- homogeneous control points, channel-first
#   out_ref    : (Bblk, dim, OU, OV)
# ----------------------------------------------------------------------------
def surf_eval_kernel(bu_blk_ref, bvt_ref, ctrl_ref, out_ref):
    blk_b, d1, m, n = ctrl_ref.shape
    dim = out_ref.shape[1]
    ou = out_ref.shape[2]
    ov = out_ref.shape[3]
    d1ou = bu_blk_ref.shape[0]

    # Stage 1: v-direction contraction for every (batch, channel, u-row) in a
    # single 2-D matmul.  The reshape only merges leading dims (tile-aligned).
    a = ctrl_ref[...].reshape(blk_b * d1 * m, n)                       # (Bblk*D1*M, N)
    t = jnp.dot(a, bvt_ref[...], preferred_element_type=jnp.float32)  # (Bblk*D1*M, OV)
    t = t.reshape(blk_b, d1 * m, ov)                                   # (Bblk, D1*M, OV)

    # Stage 2: u-direction contraction.  kron(I_D1, Bu) keeps all D1 channels
    # inside one K = D1*M contraction, so this is one batched MXU matmul over
    # the batch block instead of D1 tiny K=M matmuls per batch element.
    bu_blk = jnp.broadcast_to(bu_blk_ref[...][None], (blk_b, d1ou, d1 * m))
    r = lax.dot_general(
        bu_blk, t,
        dimension_numbers=(((2,), (1,)), ((0,), (0,))),
        preferred_element_type=jnp.float32)                            # (Bblk, D1*OU, OV)
    r = r.reshape(blk_b, d1, ou, ov)                                   # (Bblk, D1, OU, OV)

    # Stage 3: rational divide.  EUP approximate reciprocal (separate VLIW
    # slot) refined with one Newton step -> full f32 accuracy, no VPU divide.
    w = r[:, d1 - 1]                                                   # (Bblk, OU, OV)
    inv_w = pl.reciprocal(w, approx=True)
    inv_w = inv_w * (2.0 - w * inv_w)
    out_ref[...] = (r[:, :dim] * inv_w[:, None]).astype(out_ref.dtype)


def _pick_block_b(batch, max_block=16):
    """Largest divisor of `batch` that is <= max_block while keeping the grid
    length >= 2 (so both v7x TensorCores get work); amortizes the ~0.35us
    per-grid-step pipeline overhead over many batch elements."""
    best = 1
    for cand in range(2, min(batch // 2, max_block) + 1):
        if batch % cand == 0:
            best = cand
    return best


def surf_eval_pallas(ctrl_cf, bu_blk, bvt):
    """ctrl_cf: (B, D1, M, N) channel-first homogeneous control points."""
    B, D1, M, N = ctrl_cf.shape
    dim = D1 - 1
    OU = bu_blk.shape[0] // D1
    OV = bvt.shape[1]

    block_b = _pick_block_b(B)
    nb = B // block_b

    # Advisory cost estimate so XLA can schedule/overlap the boundary
    # transposes and neighbouring ops around this small custom call.
    flops = int(2 * B * D1 * M * N * OV            # stage 1
                + 2 * B * (D1 * OU) * (D1 * M) * OV  # stage 2 (kron-padded)
                + 2 * B * dim * OU * OV)             # rational divide multiplies
    bytes_accessed = int(4 * (ctrl_cf.size + bu_blk.size + bvt.size
                              + B * dim * OU * OV))

    return pl.pallas_call(
        surf_eval_kernel,
        out_shape=jax.ShapeDtypeStruct((B, dim, OU, OV), jnp.float32),
        grid_spec=pltpu.PrefetchScalarGridSpec(
            num_scalar_prefetch=0,
            grid=(nb,),
            in_specs=[
                pl.BlockSpec((D1 * OU, D1 * M), lambda i: (0, 0)),   # resident
                pl.BlockSpec((N, OV), lambda i: (0, 0)),             # resident
                pl.BlockSpec((block_b, D1, M, N), lambda i: (i, 0, 0, 0)),
            ],
            out_specs=pl.BlockSpec((block_b, dim, OU, OV), lambda i: (i, 0, 0, 0)),
        ),
        compiler_params=pltpu.CompilerParams(dimension_semantics=("parallel",)),
        cost_estimate=pl.CostEstimate(flops=flops,
                                      transcendentals=int(B * OU * OV),
                                      bytes_accessed=bytes_accessed),
    )(bu_blk, bvt, ctrl_cf)


@jax.jit
def surf_eval_forward(ctrl_pts, bu_blk, bvt):
    # ctrl_pts: (B, m, n, dim+1)  (PyTorch channel-last layout)
    # The channel-first transpose is required by the channel-last PyTorch
    # interface (dim=3 is not lane-friendly); it is tiny and overlapped by XLA.
    ctrl_cf = jnp.transpose(ctrl_pts.astype(jnp.float32), (0, 3, 1, 2))  # (B, D1, m, n)
    out_cf = surf_eval_pallas(ctrl_cf, bu_blk, bvt)                      # (B, dim, OU, OV)
    return jnp.transpose(out_cf, (0, 2, 3, 1))                           # (B, OU, OV, dim)


# ----------------------------------------------------------------------------
# Module-equivalent wrapper
# ----------------------------------------------------------------------------
class SurfEvalJax:
    def __init__(self, m, n, dimension=3, p=3, q=3, knot_u=None, knot_v=None,
                 out_dim_u=32, out_dim_v=128):
        self.m, self.n = m, n
        self.p, self.q = p, q
        self._dimension = dimension
        self.U = np.asarray(knot_u, dtype=np.float64) if knot_u is not None \
            else gen_knot_vector(p, m)
        self.V = np.asarray(knot_v, dtype=np.float64) if knot_v is not None \
            else gen_knot_vector(q, n)
        self.u = np.linspace(0.0 + DELTA, 1.0 - DELTA, out_dim_u, dtype=np.float64)
        self.v = np.linspace(0.0 + DELTA, 1.0 - DELTA, out_dim_v, dtype=np.float64)
        self.uspan, self.Nu = pre_compute_basis(self.u, self.U, m, p)
        self.vspan, self.Nv = pre_compute_basis(self.v, self.V, n, q)

        Bu = dense_basis_matrix(self.uspan, self.Nu, m, p)   # (OU, m)
        Bv = dense_basis_matrix(self.vspan, self.Nv, n, q)   # (OV, n)
        d1 = dimension + 1
        # kron(I_D1, Bu): block-diagonal u-basis that folds all D1 homogeneous
        # channels into a single K = D1*m contraction inside the kernel.
        self.BuBlk = jnp.asarray(np.kron(np.eye(d1, dtype=np.float32), Bu))  # (D1*OU, D1*m)
        self.BvT = jnp.asarray(Bv.T)                                          # (n, OV)

    def __call__(self, ctrl_pts):
        # ctrl_pts: (B, m, n, dim+1) -> (B, out_dim_u, out_dim_v, dim)
        return surf_eval_forward(ctrl_pts, self.BuBlk, self.BvT)


# ----------------------------------------------------------------------------
# Pure-NumPy reference mirroring the PyTorch 'tc' loops (for correctness check)
# ----------------------------------------------------------------------------
def ref_forward(ctrl, uspan, vspan, Nu, Nv, p, q, dim):
    surf = None
    for l in range(p + 1):
        for r in range(q + 1):
            gathered = ctrl[:, uspan - p + l, :, :][:, :, vspan - q + r, :]
            term = (Nu[:, l][None, :, None, None] * gathered
                    * Nv[:, r][None, None, :, None])
            surf = term if surf is None else surf + term
    return surf[..., :dim] / surf[..., dim:dim + 1]


if __name__ == "__main__":
    # Small shapes consistent with the module (default out_dim_u=32, out_dim_v=128
    # -> lane-dense output; batch blocked 2 per grid step, grid length 2).
    B = 4
    m, n = 8, 8            # control grid
    p, q = 3, 3            # degrees
    dim = 3
    out_dim_u, out_dim_v = 32, 128

    key = jax.random.PRNGKey(0)
    k1, k2 = jax.random.split(key)
    coords = jax.random.normal(k1, (B, m, n, dim), dtype=jnp.float32)
    weights = jax.random.uniform(k2, (B, m, n, 1), dtype=jnp.float32,
                                 minval=0.5, maxval=1.5)
    ctrl_pts = jnp.concatenate([coords, weights], axis=-1)   # (B, m, n, dim+1)

    layer = SurfEvalJax(m, n, dimension=dim, p=p, q=q,
                        out_dim_u=out_dim_u, out_dim_v=out_dim_v)
    out = jax.block_until_ready(layer(ctrl_pts))

    # Correctness vs. the gather-based reference (same math as PyTorch 'tc' path)
    ref = ref_forward(np.asarray(ctrl_pts, dtype=np.float64),
                      layer.uspan, layer.vspan,
                      layer.Nu.astype(np.float64), layer.Nv.astype(np.float64),
                      p, q, dim)
    assert out.shape == (B, out_dim_u, out_dim_v, dim)
    assert np.allclose(np.asarray(out), ref, atol=1e-4, rtol=1e-4), \
        "Pallas SurfEval output mismatch vs reference"

    print("KERNEL_OK")
</pallas_src>

<mosaic_0001>
module attributes {stable_mosaic.version = 11 : i64} {
  func.func @surf_eval_kernel(%arg0: i32, %arg1: memref<128x32xf32, #tpu.memory_space<vmem>>, %arg2: memref<8x128xf32, #tpu.memory_space<vmem>>, %arg3: memref<2x4x8x8xf32, #tpu.memory_space<vmem>>, %arg4: memref<2x3x32x128xf32, #tpu.memory_space<vmem>>) attributes {dimension_semantics = [#tpu.dimension_semantics<parallel>], iteration_bounds = array<i64: 2>, scalar_prefetch = 0 : i64, scratch_operands = 0 : i64, tpu.core_type = #tpu.core_type<tc>, window_params = [{pipeline_mode = #tpu.pipeline_mode<synchronous>, transform_indices = @transform_0, window_bounds = array<i64: 128, 32>}, {pipeline_mode = #tpu.pipeline_mode<synchronous>, transform_indices = @transform_1, window_bounds = array<i64: 8, 128>}, {transform_indices = @transform_2, window_bounds = array<i64: 2, 4, 8, 8>}, {transform_indices = @transform_3, window_bounds = array<i64: 2, 3, 32, 128>}]} {
    %c0 = arith.constant 0 : index
    %c0_0 = arith.constant 0 : index
    %c0_1 = arith.constant 0 : index
    %c0_2 = arith.constant 0 : index
    %0 = vector.load %arg3[%c0, %c0_0, %c0_1, %c0_2] : memref<2x4x8x8xf32, #tpu.memory_space<vmem>>, vector<2x4x8x8xf32>
    %1 = vector.shape_cast %0 : vector<2x4x8x8xf32> to vector<64x8xf32>
    %c0_3 = arith.constant 0 : index
    %c0_4 = arith.constant 0 : index
    %2 = vector.load %arg2[%c0_3, %c0_4] : memref<8x128xf32, #tpu.memory_space<vmem>>, vector<8x128xf32>
    %cst = arith.constant dense<0.000000e+00> : vector<64x128xf32>
    %3 = tpu.matmul %1, %2, %cst {dimension_numbers = #tpu.dot_dimension_numbers<[1], [0], [0], [1], [0, 0, 1, 1], [], []>} : vector<64x8xf32>, vector<8x128xf32>, vector<64x128xf32> -> vector<64x128xf32>
    %4 = vector.shape_cast %3 : vector<64x128xf32> to vector<2x32x128xf32>
    %c0_5 = arith.constant 0 : index
    %c0_6 = arith.constant 0 : index
    %5 = vector.load %arg1[%c0_5, %c0_6] : memref<128x32xf32, #tpu.memory_space<vmem>>, vector<128x32xf32>
    %6 = vector.shape_cast %5 : vector<128x32xf32> to vector<1x128x32xf32>
    %7 = vector.shape_cast %6 : vector<1x128x32xf32> to vector<1x128x32xf32>
    %8 = vector.broadcast %7 : vector<1x128x32xf32> to vector<2x128x32xf32>
    %cst_7 = arith.constant dense<0.000000e+00> : vector<2x128x128xf32>
    %9 = tpu.matmul %8, %4, %cst_7 {dimension_numbers = #tpu.dot_dimension_numbers<[2], [1], [1], [2], [0, 0, 0, 1, 1, 2], [0], [0]>} : vector<2x128x32xf32>, vector<2x32x128xf32>, vector<2x128x128xf32> -> vector<2x128x128xf32>
    %10 = vector.shape_cast %9 : vector<2x128x128xf32> to vector<2x4x32x128xf32>
    %11 = vector.extract_strided_slice %10 {offsets = [0, 3, 0, 0], sizes = [2, 1, 32, 128], strides = [1, 1, 1, 1]} : vector<2x4x32x128xf32> to vector<2x1x32x128xf32>
    %12 = vector.shape_cast %11 : vector<2x1x32x128xf32> to vector<2x32x128xf32>
    %13 = tpu.reciprocal %12 {approx = true} : vector<2x32x128xf32> -> vector<2x32x128xf32>
    %14 = arith.mulf %12, %13 : vector<2x32x128xf32>
    %cst_8 = arith.constant 2.000000e+00 : f32
    %15 = vector.broadcast %cst_8 : f32 to vector<2x32x128xf32>
    %16 = arith.subf %15, %14 : vector<2x32x128xf32>
    %17 = arith.mulf %13, %16 : vector<2x32x128xf32>
    %18 = vector.extract_strided_slice %10 {offsets = [0, 0, 0, 0], sizes = [2, 3, 32, 128], strides = [1, 1, 1, 1]} : vector<2x4x32x128xf32> to vector<2x3x32x128xf32>
    %19 = vector.shape_cast %17 : vector<2x32x128xf32> to vector<2x1x32x128xf32>
    %20 = vector.broadcast %19 : vector<2x1x32x128xf32> to vector<2x3x32x128xf32>
    %21 = arith.mulf %18, %20 : vector<2x3x32x128xf32>
    %c0_9 = arith.constant 0 : index
    %c0_10 = arith.constant 0 : index
    %c0_11 = arith.constant 0 : index
    %c0_12 = arith.constant 0 : index
    %22 = vector.load %arg4[%c0_9, %c0_10, %c0_11, %c0_12] : memref<2x3x32x128xf32, #tpu.memory_space<vmem>>, vector<2x3x32x128xf32>
    tpu.vector_store %arg4[%c0_9, %c0_10, %c0_11, %c0_12], %21 {strides = array<i32>} : memref<2x3x32x128xf32, #tpu.memory_space<vmem>>, vector<2x3x32x128xf32>,
    return
  }
  func.func @transform_0(%arg0: i32) -> (i32, i32) {
    %c0_i32 = arith.constant 0 : i32
    %c0_i32_0 = arith.constant 0 : i32
    %c0_i32_1 = arith.constant 0 : i32
    return %c0_i32, %c0_i32_0 : i32, i32
  }
  func.func @transform_1(%arg0: i32) -> (i32, i32) {
    %c0_i32 = arith.constant 0 : i32
    %c0_i32_0 = arith.constant 0 : i32
    %c0_i32_1 = arith.constant 0 : i32
    return %c0_i32, %c0_i32_0 : i32, i32
  }
  func.func @transform_2(%arg0: i32) -> (i32, i32, i32, i32) {
    %c0_i32 = arith.constant 0 : i32
    %c0_i32_0 = arith.constant 0 : i32
    %c0_i32_1 = arith.constant 0 : i32
    %c0_i32_2 = arith.constant 0 : i32
    return %arg0, %c0_i32, %c0_i32_0, %c0_i32_1 : i32, i32, i32, i32
  }
  func.func @transform_3(%arg0: i32) -> (i32, i32, i32, i32) {
    %c0_i32 = arith.constant 0 : i32
    %c0_i32_0 = arith.constant 0 : i32
    %c0_i32_1 = arith.constant 0 : i32
    %c0_i32_2 = arith.constant 0 : i32
    return %arg0, %c0_i32, %c0_i32_0, %c0_i32_1 : i32, i32, i32, i32
  }
}

</mosaic_0001>

<bundles_post_ra>
// kernel: surf_eval_forward.1
= control target key start
LH: loop header
LB: loop body
LE: loop exit
PB: predicated region body
PF: predicated region fallthrough
CT: control target
= control target key end

     0   :  { %8 = vsyncpa [#allocation3], 0  ;;  %s1448_s0 = inlined_call_operand.vmem [shape: f32[128,32], index: 0, kind: input, shape index: {}]   ;;  %s1449_s1 = inlined_call_operand.vmem [shape: f32[8,128], index: 1, kind: input, shape index: {}]   ;;  %s1450_s2 = inlined_call_operand.vmem [shape: f32[4,4,8,8], index: 2, kind: input, shape index: {}]   ;;  %s1451_s3 = inlined_call_operand.hbm [shape: f32[4,3,32,128], index: 3, kind: output, shape index: {}]  }
   0x1   :  { %10 = vsyncpa [#allocation3 + $0x1], 0  ;;  %s1170_s12 = smov 0   ;;  %s1172_s13 = smov 0  }
   0x2   :  { %s1174_s14 = smov 0   ;;  %s1176_s15 = smov 0  }
   0x3 LB: > { %s1191_s16 = sadd.s32 4294967295, %s1145_s15   ;;  %s826_s17 = sadd.s32 4294967294, %s1145_s15   ;;  %s1145_s15 = sphi %s1176_s15, %s1457_s15   ;;  %s1141_s14 = sphi %s1174_s14, %s1456_s14   ;;  %s1137_s13 = sphi %s1172_s13, %s1455_s13   ;;  %s1133_s12 = sphi %s1170_s12, %s1454_s12  }
   0x4   : > { %s1195_s18 = sadd.s32 1, %s1145_s15   ;;  %s91_s19 = sadd.s32 1, %s1141_s14 }
   0x5   : > { %s88_s20 = ssub.s32 %s1145_s15, %s1195_s18  ;;  %p101_p0 = scmp.ne.s32.totalorder %s1141_s14, %s1137_s13 }
   0x6   : > { %p89_p1 = scmp.eq.s32.totalorder %s88_s20, 0  ;;  %p102_p2 = scmp.eq.s32.totalorder %s1191_s16, 1 }
   0x7   : > { %p107_p3 = scmp.ne.s32.totalorder %s1137_s13, %s1133_s12  ;;  %p108_p4 = scmp.eq.s32.totalorder %s826_s17, 1 }
   0x8   : > { %s1206_s21 = scalar_select %p89_p1, %s1141_s14, %s91_s19  }
   0x9   : > { %p1208_p5 = por %p102_p2, %p101_p0  ;;  %p1212_p6 = por %p108_p4, %p107_p3 }
   0xa   : > { %p829_p7 = scmp.ge.s32.totalorder %s1145_s15, 1  ;;  %p142_p8 = scmp.lt.s32.totalorder %s1145_s15, 3 }
   0xc   : > { %p143_p9 = pnand %p829_p7, %p142_p8 }
   0xd   : > { %v183_v0 = vld [vmem:[%s1449_s1] sm:$0xff] (!%p143_p9)  ;;  %s830_s26 = sshll.u32 (!%p143_p9), %s1191_s16, 1  ;;  %vm184_vm0 = vcmask (!%p143_p9), 64512   ;;  %vm330_vm1 = vcmask (!%p143_p9), 261120   ;;  %v315_v22 = vld [vmem:[%s1448_s0 + $0x8] sm:$0xff] (!%p143_p9)  ;;  %v316_v23 = vld [vmem:[%s1448_s0 + $0x10] sm:$0xff] (!%p143_p9) }
   0xe   : > { %146 = sbr.rel (%p143_p9) target bundleno = 531 (0x213), region = 32  ;;  %928 = vmatprep.subr.mxu0 (!%p143_p9), %v183_v0  ;;  %1022 = vmatprep.subr.mxu1 (!%p143_p9), %v183_v0  ;;  %p168_p10 = scmp.lt.s32.totalorder (!%p143_p9), %s830_s26, 3  ;;  %v314_v9 = vld [vmem:[%s1448_s0] sm:$0xff] (!%p143_p9)  ;;  %v317_v24 = vld [vmem:[%s1448_s0 + $0x18] sm:$0xff] (!%p143_p9)  ;;  %v319_v26 = vld [vmem:[%s1448_s0 + $0x28] sm:$0xff] (!%p143_p9) }
   0xf   : > { %929 = vmatpush3.msra.mxu0 (!%p143_p9), %v183_v0  ;;  %1023 = vmatpush3.msra.mxu1 (!%p143_p9), %v183_v0  ;;  %v318_v25 = vld [vmem:[%s1448_s0 + $0x20] sm:$0xff] (!%p143_p9)  ;;  %v320_v27 = vld [vmem:[%s1448_s0 + $0x30] sm:$0xff] (!%p143_p9)  ;;  %v321_v28 = vld [vmem:[%s1448_s0 + $0x38] sm:$0xff] (!%p143_p9)  ;;  %s1147_s9 = smov (!%p143_p9), [#allocation2]  }
  0x10   : > { %v322_v29 = vld [vmem:[%s1448_s0 + $0x40] sm:$0xff] (!%p143_p9)  ;;  %v323_v30 = vld [vmem:[%s1448_s0 + $0x48] sm:$0xff] (!%p143_p9)  ;;  %v324_v31 = vld [vmem:[%s1448_s0 + $0x50] sm:$0xff] (!%p143_p9)  ;;  %s1087_s10 = sshll.u32 (!%p143_p9), %s1147_s9, 4  ;;  %s1088_s10 = int_to_ptr.vmem [resolvable:$false] %s1087_s10 }
  0x11   : > { %v325_v32 = vld [vmem:[%s1448_s0 + $0x58] sm:$0xff] (!%p143_p9)  ;;  %v326_v33 = vld [vmem:[%s1448_s0 + $0x60] sm:$0xff] (!%p143_p9)  ;;  %v327_v34 = vld [vmem:[%s1448_s0 + $0x68] sm:$0xff] (!%p143_p9)  ;;  %s1089_s11 = scalar_lea.vmem (!%p143_p9), %s1088_s10, 6144 }
  0x12   : > { %v328_v35 = vld [vmem:[%s1448_s0 + $0x70] sm:$0xff] (!%p143_p9)  ;;  %v329_v36 = vld [vmem:[%s1448_s0 + $0x78] sm:$0xff] (!%p143_p9) }
  0x15   : > { %s1459_s26 = smov (!%p168_p10, %s830_s26), 3 }
  0x16   : > { %s878_s27 = sshll.u32 %s1459_s26, 5 }
  0x17   : > { %s172_s30 = scalar_lea.vmem %s1450_s2, %s878_s27  ;;  %s164_s27 = sand.u32 1, %s1137_s13  }
  0x18   : > { %v175_v1 = vld [vmem:[%s172_s30] sm:$0xff]  ;;  %v176_v3 = vld [vmem:[%s172_s30 + $0x8] sm:$0xff]  ;;  %v177_v5 = vld [vmem:[%s172_s30 + $0x10] sm:$0xff]  ;;  %s1024_s28 = smul.u32 192, %s164_s27  ;;  %s1407_s7 = scalar_lea.sflag [#allocation3], %s164_s27 }
  0x19   : > { %v179_v2 = vld [vmem:[%s172_s30 + $0x20] sm:$0xff]  ;;  %930 = vmatprep.mubr.msk.f32.mxu0 %vm184_vm0, %v175_v1  ;;  %v180_v4 = vld [vmem:[%s172_s30 + $0x28] sm:$0xff]  ;;  %v181_v6 = vld [vmem:[%s172_s30 + $0x30] sm:$0xff] }
  0x1a   : > { %936 = vmatprep.mubr.msk.f32.mxu1 %vm184_vm0, %v179_v2  ;;  %931 = vmatmul.mubr.msk.f32.vlgmr.msra.gmra.mrb[0].mxu0 %vm184_vm0, %v176_v3  ;;  %v178_v7 = vld [vmem:[%s172_s30 + $0x18] sm:$0xff]  ;;  %s1353_s29 = scalar_lea.vmem [#allocation2], %s1024_s28 }
  0x1b   : > { %937 = vmatmul.mubr.msk.f32.vlgmr.msra.gmra.mrb[0].mxu1 %vm184_vm0, %v180_v4  ;;  %933 = vmatprep.mubr.msk.f32.mxu0 %vm184_vm0, %v177_v5  ;;  %v182_v8 = vld [vmem:[%s172_s30 + $0x38] sm:$0xff]  ;;  %s1025_s30 = smul.u32 3072, %s1191_s16  ;;  %s764_s4 = sshll.u32 %s1353_s29, 4  ;;  %s1394_s4 = int_to_ptr.vmem [resolvable:$true] %s764_s4 }
  0x1c   : > { %939 = vmatprep.mubr.msk.f32.mxu1 %vm184_vm0, %v181_v6  ;;  %s1083_s8 = scalar_lea.vmem %s1394_s4, 3072  ;;  %p1090_p0 = scmp.lt.s32.totalorder %s1394_s4, %s1088_s10 }
  0x1d   : > { %s1392_s6 = scalar_lea.hbm %s1451_s3, %s1025_s30  ;;  %p1084_p11 = scmp.ne.s32.totalorder %s1394_s4, %s1083_s8 }
  0x1e   : > { %934 = vmatmul.mubr.msk.f32.gmra.mrb[2].mxu0 %vm184_vm0, %v178_v7  ;;  %p1091_p1 = scmp.lt.s32.totalorder %s1089_s11, %s1083_s8 }
  0x1f   : > { %940 = vmatmul.mubr.msk.f32.gmra.mrb[2].mxu1 %vm184_vm0, %v182_v8  ;;  %982 = vmatprep.mubr.msk.f32.mxu0 %vm330_vm1, %v314_v9  ;;  %p1085_p12 = pnand %p1084_p11, %p1208_p5 }
  0x20   : > { %950 = vmatprep.mubr.msk.f32.mxu1 %vm330_vm1, %v314_v9  ;;  %p1092_p2 = por %p1091_p1, %p1090_p0 }
  0x21   : > { %p1086_p13 = pneg %p1085_p12 }
  0x23   : > { %p1093_p3 = pnand %p1092_p2, %p1086_p13 }
  0xed   : > { %v932_v10 = vpop.f32.mrb[0].mxu0 }
  0xee   : > { %v938_v11 = vpop.f32.mrb[0].mxu1  ;;  %v275_v12 = vpop.f32.mrb[1].mxu0 }
  0xef   : > { %v295_v13 = vpop.f32.mrb[1].mxu1  ;;  %v1006_v14 = vpack.c.bf16 %v932_v10, %v275_v12 }
  0xf0   : > { %v1014_v15 = vpack.c.bf16 %v938_v11, %v295_v13 }
  0xf1   : > { %v935_v16 = vpop.f32.mrb[2].mxu0  ;;  %1007 = vmatprep.subr.bf16.mxu1 %v1006_v14 }
  0xf2   : > { %v941_v17 = vpop.f32.mrb[2].mxu1  ;;  %1015 = vmatprep.subr.bf16.mxu0 %v1014_v15  ;;  %v285_v18 = vpop.f32.mrb[3].mxu0  ;;  %1009 = vmatpush3.bf16.msra.mxu1 %v1006_v14 }
  0xf3   : > { %v305_v19 = vpop.f32.mrb[3].mxu1  ;;  %1017 = vmatpush3.bf16.msra.mxu0 %v1014_v15  ;;  %v1010_v20 = vpack.c.bf16 %v935_v16, %v285_v18 }
  0xf4   : > { %v1018_v21 = vpack.c.bf16 %v941_v17, %v305_v19 }
  0xf5   : > { %1011 = vmatprep.subr.bf16.mxu1 %v1010_v20 }
  0xf6   : > { %1019 = vmatprep.subr.bf16.mxu0 %v1018_v21  ;;  %1013 = vmatpush3.bf16.msra.mxu1 %v1010_v20 }
  0xf7   : > { %1021 = vmatpush3.bf16.msra.mxu0 %v1018_v21 }
  0xf9   : > { %951 = vmatmul.mubr.msk.f32.vlgmr.msra.gmra.mrb[4].mxu1 %vm330_vm1, %v315_v22 }
  0xfa   : > { %983 = vmatmul.mubr.msk.f32.vlgmr.msra.gmra.mrb[4].mxu0 %vm330_vm1, %v315_v22  ;;  %953 = vmatprep.mubr.msk.f32.mxu1 %vm330_vm1, %v316_v23 }
  0xfb   : > { %985 = vmatprep.mubr.msk.f32.mxu0 %vm330_vm1, %v316_v23 }
  0xfd   : > { %954 = vmatmul.mubr.msk.f32.gmra.mrb[6].mxu1 %vm330_vm1, %v317_v24 }
  0xfe   : > { %986 = vmatmul.mubr.msk.f32.gmra.mrb[6].mxu0 %vm330_vm1, %v317_v24  ;;  %956 = vmatprep.mubr.msk.f32.mxu1 %vm330_vm1, %v318_v25 }
  0xff   : > { %988 = vmatprep.mubr.msk.f32.mxu0 %vm330_vm1, %v318_v25 }
 0x101   : > { %957 = vmatmul.mubr.msk.f32.gmra.mrb[8].mxu1 %vm330_vm1, %v319_v26 }
 0x102   : > { %989 = vmatmul.mubr.msk.f32.gmra.mrb[8].mxu0 %vm330_vm1, %v319_v26  ;;  %959 = vmatprep.mubr.msk.f32.mxu1 %vm330_vm1, %v320_v27 }
 0x103   : > { %991 = vmatprep.mubr.msk.f32.mxu0 %vm330_vm1, %v320_v27 }
 0x105   : > { %960 = vmatmul.mubr.msk.f32.gmra.mrb[10].mxu1 %vm330_vm1, %v321_v28 }
 0x106   : > { %992 = vmatmul.mubr.msk.f32.gmra.mrb[10].mxu0 %vm330_vm1, %v321_v28  ;;  %962 = vmatprep.mubr.msk.f32.mxu1 %vm330_vm1, %v322_v29 }
 0x107   : > { %994 = vmatprep.mubr.msk.f32.mxu0 %vm330_vm1, %v322_v29 }
 0x109   : > { %963 = vmatmul.mubr.msk.f32.gmra.mrb[12].mxu1 %vm330_vm1, %v323_v30 }
 0x10a   : > { %995 = vmatmul.mubr.msk.f32.gmra.mrb[12].mxu0 %vm330_vm1, %v323_v30  ;;  %965 = vmatprep.mubr.msk.f32.mxu1 %vm330_vm1, %v324_v31 }
 0x10b   : > { %997 = vmatprep.mubr.msk.f32.mxu0 %vm330_vm1, %v324_v31 }
 0x10d   : > { %966 = vmatmul.mubr.msk.f32.gmra.mrb[14].mxu1 %vm330_vm1, %v325_v32 }
 0x10e   : > { %998 = vmatmul.mubr.msk.f32.gmra.mrb[14].mxu0 %vm330_vm1, %v325_v32  ;;  %968 = vmatprep.mubr.msk.f32.mxu1 %vm330_vm1, %v326_v33 }
 0x10f   : > { %1000 = vmatprep.mubr.msk.f32.mxu0 %vm330_vm1, %v326_v33 }
 0x111   : > { %969 = vmatmul.mubr.msk.f32.gmra.mrb[16].mxu1 %vm330_vm1, %v327_v34 }
 0x112   : > { %1001 = vmatmul.mubr.msk.f32.gmra.mrb[16].mxu0 %vm330_vm1, %v327_v34  ;;  %971 = vmatprep.mubr.msk.f32.mxu1 %vm330_vm1, %v328_v35 }
 0x113   : > { %1003 = vmatprep.mubr.msk.f32.mxu0 %vm330_vm1, %v328_v35 }
 0x115   : > { %972 = vmatmul.mubr.msk.f32.gmra.mrb[18].mxu1 %vm330_vm1, %v329_v36 }
 0x116   : > { %1004 = vmatmul.mubr.msk.f32.gmra.mrb[18].mxu0 %vm330_vm1, %v329_v36 }
 0x1cc   : > { %v952_v37 = vpop.f32.mrb[4].mxu1 }
 0x1cd   : > { %v1313_v38 = vpop.f32.mrb[4].mxu0  ;;  %v1315_v39 = vpop.f32.mrb[5].mxu1 }
 0x1ce   : > { %v1317_v40 = vpop.f32.mrb[5].mxu0 }
 0x1d0   : > { %v1319_v41 = vpop.f32.mrb[6].mxu1 }
 0x1d1   : > { %v1321_v42 = vpop.f32.mrb[6].mxu0  ;;  %v1323_v43 = vpop.f32.mrb[7].mxu1 }
 0x1d2   : > { %v1325_v44 = vpop.f32.mrb[7].mxu0 }
 0x1d4   : > { %v958_v45 = vpop.f32.mrb[8].mxu1 }
 0x1d5   : > { %v990_v46 = vpop.f32.mrb[8].mxu0  ;;  %v1327_v47 = vpop.f32.mrb[9].mxu1 }
 0x1d6   : > { %v1329_v48 = vpop.f32.mrb[9].mxu0 }
 0x1d8   : > { %v1331_v49 = vpop.f32.mrb[10].mxu1 }
 0x1d9   : > { %v1333_v50 = vpop.f32.mrb[10].mxu0  ;;  %v1335_v51 = vpop.f32.mrb[11].mxu1 }
 0x1da   : > { %v1337_v52 = vpop.f32.mrb[11].mxu0 }
 0x1dc   : > { %v964_v53 = vpop.f32.mrb[12].mxu1 }
 0x1dd   : > { %v996_v54 = vpop.f32.mrb[12].mxu0  ;;  %v485_v55 = vpop.f32.mrb[13].mxu1 }
 0x1de   : > { %v1339_v56 = vpop.f32.mrb[13].mxu0 }
 0x1e0   : > { %v1341_v57 = vpop.f32.mrb[14].mxu1 }
 0x1e1   : > { %v1343_v58 = vpop.f32.mrb[14].mxu0  ;;  %v1345_v59 = vpop.f32.mrb[15].mxu1 }
 0x1e2   : > { %v1347_v60 = vpop.f32.mrb[15].mxu0 }
 0x1e4   : > { %v970_v61 = vpop.f32.mrb[16].mxu1 }
 0x1e5   : > { %v1002_v62 = vpop.f32.mrb[16].mxu0  ;;  %1067 = vrcp.f32 %v970_v61  ;;  %v505_v63 = vpop.f32.mrb[17].mxu1 }
 0x1e6   : > { %v650_v0 = vpop.f32.mrb[17].mxu0  ;;  %1069 = vrcp.f32 %v1002_v62 }
 0x1e7   : > { %1071 = vrcp.f32 %v505_v63 }
 0x1e8   : > { %1073 = vrcp.f32 %v650_v0  ;;  %v973_v1 = vpop.f32.mrb[18].mxu1 }
 0x1e9   : > { %v1005_v2 = vpop.f32.mrb[18].mxu0  ;;  %1075 = vrcp.f32 %v973_v1  ;;  %v515_v3 = vpop.f32.mrb[19].mxu1 }
 0x1ea   : > { %v660_v4 = vpop.f32.mrb[19].mxu0  ;;  %1077 = vrcp.f32 %v1005_v2 }
 0x1eb   : > { %1079 = vrcp.f32 %v515_v3 }
 0x1ec   : > { %1081 = vrcp.f32 %v660_v4 }
 0x1ef   : > { %v1068_v5 = vpop.eup %1067 }
 0x1f0   : > { %v1070_v6 = vpop.eup %1069  ;;  %v678_v7 = vmul.f32 %v1068_v5, %v970_v61 }
 0x1f1   : > { %v1072_v8 = vpop.eup %1071  ;;  %v682_v9 = vmul.f32 %v1070_v6, %v1002_v62 }
 0x1f2   : > { %v1074_v10 = vpop.eup %1073  ;;  %v686_v11 = vsub.f32 2.0, %v678_v7  ;;  %v677_v12 = vmul.f32 %v1072_v8, %v505_v63 }
 0x1f3   : > { %v1076_v13 = vpop.eup %1075  ;;  %v690_v14 = vsub.f32 2.0, %v682_v9  ;;  %v681_v15 = vmul.f32 %v1074_v10, %v650_v0 }
 0x1f4   : > { %v1078_v16 = vpop.eup %1077  ;;  %v694_v17 = vmul.f32 %v1068_v5, %v686_v11  ;;  %v685_v18 = vsub.f32 2.0, %v677_v12  ;;  %v680_v19 = vmul.f32 %v1076_v13, %v973_v1 }
 0x1f5   : > { %v698_v20 = vmul.f32 %v1070_v6, %v690_v14  ;;  %v689_v21 = vsub.f32 2.0, %v681_v15  ;;  %v684_v22 = vmul.f32 %v1078_v16, %v1005_v2  ;;  %v1080_v23 = vpop.eup %1079 }
 0x1f6   : > { %v702_v24 = vmul.f32 %v952_v37, %v694_v17  ;;  %v706_v25 = vmul.f32 %v958_v45, %v694_v17  ;;  %v710_v26 = vmul.f32 %v964_v53, %v694_v17  ;;  %v693_v27 = vmul.f32 %v1072_v8, %v685_v18  ;;  %v1082_v28 = vpop.eup %1081 }
 0x1f7   : > { %v714_v29 = vmul.f32 %v1313_v38, %v698_v20  ;;  %v718_v30 = vmul.f32 %v990_v46, %v698_v20  ;;  %v722_v31 = vmul.f32 %v996_v54, %v698_v20  ;;  %v697_v32 = vmul.f32 %v1074_v10, %v689_v21 }
 0x1f8   : > { %726 = vst [vmem:[%s1353_s29 + $0x8] sm:$0xff] %v702_v24  ;;  %730 = vst [vmem:[%s1353_s29 + $0x28] sm:$0xff] %v706_v25  ;;  %v701_v33 = vmul.f32 %v693_v27, %v1315_v39  ;;  %v705_v34 = vmul.f32 %v693_v27, %v1327_v47  ;;  %v709_v35 = vmul.f32 %v693_v27, %v485_v55  ;;  %v688_v36 = vsub.f32 2.0, %v680_v19 }
 0x1f9   : > { %734 = vst [vmem:[%s1353_s29 + $0x48] sm:$0xff] %v710_v26  ;;  %738 = vst [vmem:[%s1353_s29 + $0x68] sm:$0xff] %v714_v29  ;;  %v713_v37 = vmul.f32 %v697_v32, %v1317_v40  ;;  %v717_v38 = vmul.f32 %v697_v32, %v1329_v48  ;;  %v721_v45 = vmul.f32 %v697_v32, %v1339_v56  ;;  %v692_v46 = vsub.f32 2.0, %v684_v22 }
 0x1fa   : > { %742 = vst [vmem:[%s1353_s29 + $0x88] sm:$0xff] %v718_v30  ;;  %746 = vst [vmem:[%s1353_s29 + $0xa8] sm:$0xff] %v722_v31  ;;  %v696_v39 = vmul.f32 %v1076_v13, %v688_v36  ;;  %v679_v47 = vmul.f32 %v1080_v23, %v515_v3  ;;  %v683_v53 = vmul.f32 %v1082_v28, %v660_v4 }
 0x1fb   : > { %725 = vst [vmem:[%s1353_s29] sm:$0xff] %v701_v33  ;;  %729 = vst [vmem:[%s1353_s29 + $0x20] sm:$0xff] %v705_v34  ;;  %v700_v40 = vmul.f32 %v1078_v16, %v692_v46 }
 0x1fc   : > { %733 = vst [vmem:[%s1353_s29 + $0x40] sm:$0xff] %v709_v35  ;;  %737 = vst [vmem:[%s1353_s29 + $0x60] sm:$0xff] %v713_v37  ;;  %v704_v48 = vmul.f32 %v1319_v41, %v696_v39  ;;  %v708_v54 = vmul.f32 %v1331_v49, %v696_v39  ;;  %v712_v55 = vmul.f32 %v1341_v57, %v696_v39  ;;  %v687_v56 = vsub.f32 2.0, %v679_v47 }
 0x1fd   : > { %741 = vst [vmem:[%s1353_s29 + $0x80] sm:$0xff] %v717_v38  ;;  %745 = vst [vmem:[%s1353_s29 + $0xa0] sm:$0xff] %v721_v45  ;;  %v716_v61 = vmul.f32 %v1321_v42, %v700_v40  ;;  %v720_v62 = vmul.f32 %v1333_v50, %v700_v40  ;;  %v724_v63 = vmul.f32 %v1343_v58, %v700_v40  ;;  %v691_v0 = vsub.f32 2.0, %v683_v53 }
 0x1fe   : > { %728 = vst [vmem:[%s1353_s29 + $0x18] sm:$0xff] %v704_v48  ;;  %732 = vst [vmem:[%s1353_s29 + $0x38] sm:$0xff] %v708_v54  ;;  %v695_v41 = vmul.f32 %v1080_v23, %v687_v56 }
 0x1ff   : > { %736 = vst [vmem:[%s1353_s29 + $0x58] sm:$0xff] %v712_v55  ;;  %740 = vst [vmem:[%s1353_s29 + $0x78] sm:$0xff] %v716_v61  ;;  %v699_v42 = vmul.f32 %v1082_v28, %v691_v0 }
 0x200   : > { %744 = vst [vmem:[%s1353_s29 + $0x98] sm:$0xff] %v720_v62  ;;  %748 = vst [vmem:[%s1353_s29 + $0xb8] sm:$0xff] %v724_v63  ;;  %v703_v49 = vmul.f32 %v695_v41, %v1323_v43  ;;  %v707_v50 = vmul.f32 %v695_v41, %v1335_v51  ;;  %v711_v57 = vmul.f32 %v695_v41, %v1345_v59 }
 0x201   : > { %v715_v58 = vmul.f32 %v699_v42, %v1325_v44  ;;  %v719_v1 = vmul.f32 %v699_v42, %v1337_v52  ;;  %v723_v43 = vmul.f32 %v699_v42, %v1347_v60 }
 0x202   : > { %727 = vst [vmem:[%s1353_s29 + $0x10] sm:$0xff] %v703_v49  ;;  %731 = vst [vmem:[%s1353_s29 + $0x30] sm:$0xff] %v707_v50 }
 0x203   : > { %735 = vst [vmem:[%s1353_s29 + $0x50] sm:$0xff] %v711_v57  ;;  %739 = vst [vmem:[%s1353_s29 + $0x70] sm:$0xff] %v715_v58 }
 0x204   : > { %743 = vst [vmem:[%s1353_s29 + $0x90] sm:$0xff] %v719_v1  ;;  %747 = vst [vmem:[%s1353_s29 + $0xb0] sm:$0xff] %v723_v43 }
 0x205   : > { %1096 = shalt.err (!%p1093_p3)
}
 0x206   : > { %s1097_s17 = scalar_lea.hbm %s1392_s6, 3072  ;;  %s1101_s24 = scalar_lea.hbm %s1451_s3, 6144 }
 0x207   : > { %p1098_p4 = scmp.ne.s32.totalorder %s1392_s6, %s1097_s17  ;;  %p1102_p9 = scmp.lt.u32.totalorder %s1392_s6, %s1451_s3 }
 0x208   : > { %p1103_p10 = scmp.lt.u32.totalorder %s1101_s24, %s1097_s17  ;;  %p1105_p12 = scmp.lt.u32.totalorder %s1097_s17, %s1392_s6 }
 0x209   : > { %p1099_p7 = pnand %p1098_p4, %p1208_p5 }
 0x20a   : > { %p1104_p11 = por %p1103_p10, %p1102_p9 }
 0x20b   : > { %p1100_p8 = pneg %p1099_p7 }
 0x20c   : > { %p1106_p13 = por %p1105_p12, %p1104_p11 }
 0x20e   : > { %p1107_p0 = pnand %p1106_p13, %p1100_p8 }
 0x210   : > { %1110 = shalt.err (!%p1107_p0)
}
 0x211   : > { %s1148_s27 = smov 128   ;;  %s1149_s28 = smov 8  }
 0x212   : > { %1026 = dma.vmem_to_hbm [thread:$0]  (%p1208_p5), %s1394_s4, 3072, %s1392_s6, %s1407_s7, %s1148_s27, %s1148_s27, %s1149_s28  }
 0x213 PF: > { %p1032_p1 = scmp.ge.s32.totalorder %s1145_s15, 2  ;;  %s779_s29 = sand.u32 1, %s1133_s12  }
 0x214   : > { %s780_s30 = scalar_lea.sflag [#allocation3], %s779_s29 }
 0x215   : > { %p1029_p2 = pnand %p1032_p1, %p1212_p6 }
 0x217   : > { %1128 = dma.done.wait (!%p1029_p2), %s780_s30, 3072  }
 0x218   : > { %1130 = vsyncadd (!%p1029_p2), %s780_s30, 4294964224  ;;  %p13_p3 = scmp.ge.s32.totalorder %s1195_s18, 4   ;;  %s1454_s12 = smov %s1137_s13 }
 0x219   : > { %s1455_s13 = smov %s1141_s14  ;;  %s1456_s14 = smov %s1206_s21 }
 0x21a   : > { %s1457_s15 = smov %s1195_s18  ;;  %15 = sbr.rel (!%p13_p3) target bundleno = 3 (0x3), region = 67 }
 0x221   :  { %785 = vsyncpa [#allocation3], 1 }
 0x222   :  { %787 = vsyncpa [#allocation3 + $0x1], 1 }

</bundles_post_ra>
